<compile_context>
chip_gen: v7x
topology: tpu7x:2x2x1
jax: 0.10.0
libtpu: 0.0.40
codegen_flags: <defaults>
</compile_context>

<pallas_src>
import math

import jax
import jax.numpy as jnp
from jax.experimental import pallas as pl
from jax.experimental.pallas import tpu as pltpu


def _cdiv(a, b):
    return (a + b - 1) // b


def _round_up(x, m):
    return ((x + m - 1) // m) * m


def _block_diag(w, pack):
    """(K, N) -> (pack*K, pack*N) block-diagonal repetition of w.

    NOTE: row packing + block-diagonal weights is only valid because the SAME
    weights apply to every edge.  A per-edge / per-group weight variant must
    not reuse this trick (it would silently mix packed edges).
    """
    if pack == 1:
        return w
    k, n = w.shape
    eye = jnp.eye(pack, dtype=w.dtype)
    return (eye[:, None, :, None] * w[None, :, None, :]).reshape(pack * k, pack * n)


def _choose_pack(d_out, max_pack):
    """Smallest row-packing factor that makes the output block lane-dense (%128)."""
    pack = 128 // math.gcd(int(d_out), 128)
    if pack > max_pack:
        # Pathological d_out (e.g. odd): cap the block-diagonal MXU overhead and
        # accept masked output stores for this rare case.
        pack = max_pack
    return max(pack, 1)


def prepare_params(params, num_node_features, *, matmul_dtype=jnp.bfloat16,
                   max_pack=16):
    """One-time weight preparation (hoist out of the per-call forward path).

    params: dict with w1 [2*Fn+Fe, 128], b1 [128], w2 [128, d_out], b2 [d_out].
    Returns a dict consumed by edge_model_forward (fused block-diagonal weights
    in the matmul dtype, f32 tiled biases, packing metadata).
    """
    fn = int(num_node_features)
    w1, b1, w2, b2 = params["w1"], params["b1"], params["w2"], params["b2"]
    d_in, hidden = w1.shape
    fe = int(d_in) - 2 * fn
    d_out = int(w2.shape[1])
    pack = _choose_pack(d_out, max_pack)

    # Fused layer-1 weight; row order [src-block | dest-block | edge-block]
    # matches the lane order assembled in the kernel:
    #   x = [src(pack*Fn) | dest(pack*Fn) | edge(pack*Fe)].
    w1f = jnp.concatenate(
        [_block_diag(w1[:fn], pack),
         _block_diag(w1[fn:2 * fn], pack),
         _block_diag(w1[2 * fn:], pack)], axis=0).astype(matmul_dtype)
    w2f = _block_diag(w2, pack).astype(matmul_dtype)
    b1f = jnp.tile(b1.reshape(1, hidden), (1, pack)).astype(jnp.float32)
    b2f = jnp.tile(b2.reshape(1, d_out), (1, pack)).astype(jnp.float32)
    return dict(w1=w1f, b1=b1f, w2=w2f, b2=b2f, pack=pack, fn=fn, fe=fe,
                hidden=int(hidden), d_out=d_out, matmul_dtype=matmul_dtype)


def edge_mlp_kernel(s_ref, d_ref, e_ref, w1_ref, b1_ref, w2_ref, b2_ref,
                    o_ref, x_ref):
    """Fused edge MLP over one tile of row-packed edges.

    s_ref/d_ref/e_ref : (tile_p, pack*Fn) / (tile_p, pack*Fn) / (tile_p, pack*Fe)
    w1_ref            : (pack*(2Fn+Fe), pack*hidden)  fused block-diag layer-1
    b1_ref / b2_ref   : (1, pack*hidden) / (1, pack*d_out)  f32
    w2_ref            : (pack*hidden, pack*d_out)     block-diag layer-2
    o_ref             : (tile_p, pack*d_out)          lane-dense output tile
    x_ref             : (tile_p, pack*(2Fn+Fe))       VMEM scratch (matmul dtype)
    """
    mm_dt = w1_ref.dtype
    nfn = s_ref.shape[1]
    nfe = e_ref.shape[1]

    # Lane-assemble the concatenated layer-1 input in VMEM scratch so layer 1 is
    # a single MXU pass (instead of three K-padded dots plus two f32 adds).
    # The .astype is an identity (no op) when the inputs are already mm_dt.
    x_ref[:, 0:nfn] = s_ref[...].astype(mm_dt)
    x_ref[:, nfn:2 * nfn] = d_ref[...].astype(mm_dt)
    x_ref[:, 2 * nfn:2 * nfn + nfe] = e_ref[...].astype(mm_dt)

    h = jnp.dot(x_ref[...], w1_ref[...],
                preferred_element_type=jnp.float32) + b1_ref[...]
    # ELU (alpha=1): x if x > 0 else exp(x) - 1, computed in f32.
    # exp(x)-1 keeps the guaranteed EUP exp lowering; max abs deviation vs
    # expm1 on the negative branch is ~6e-8, far below the mixed-precision
    # noise floor of this MLP.
    h = jnp.where(h > 0, h, jnp.exp(h) - 1.0)
    out = jnp.dot(h.astype(mm_dt), w2_ref[...],
                  preferred_element_type=jnp.float32) + b2_ref[...]
    o_ref[...] = out.astype(o_ref.dtype)


def edge_model_forward(src, dest, edge_attr, u, batch, params=None, *,
                       prepared=None, tile_e=16384, min_grid_steps=4,
                       matmul_dtype=jnp.bfloat16, out_dtype=None,
                       vmem_limit_bytes=56 * 1024 * 1024):
    """Pallas implementation of EdgeModel.forward.

    src, dest:  [E, Fn]   (f32 or bf16; bf16 is used as-is, no extra converts)
    edge_attr:  [E, Fe]
    u, batch:   unused (kept for API parity with the PyTorch module)
    params:     raw weights (used only if `prepared` is None)
    prepared:   output of prepare_params() — pass this for repeated calls so the
                tiny per-call weight-prep chain is not re-emitted every time.
    """
    del u, batch  # unused by the reference forward
    if prepared is None:
        # Convenience path only; hoist with prepare_params() for repeated calls.
        prepared = prepare_params(params, src.shape[1], matmul_dtype=matmul_dtype)

    pack = prepared["pack"]
    fn, fe = prepared["fn"], prepared["fe"]
    hidden, d_out = prepared["hidden"], prepared["d_out"]
    mm_dt = prepared["matmul_dtype"]
    E = src.shape[0]
    assert src.shape[1] == fn and dest.shape[1] == fn and edge_attr.shape[1] == fe
    if out_dtype is None:
        out_dtype = src.dtype

    # ---- row packing (free contiguous reshapes; no HBM copy) ----------------
    if E % pack:
        # Rare ragged tail (< pack rows): tiny pad.  This is the only case with
        # a wrapper-side copy; the common E % pack == 0 case is fully copy-free.
        # TODO(synk): make this case copy-free too via a small side path / manual DMA.
        tail = pack - E % pack
        src = jnp.pad(src, ((0, tail), (0, 0)))
        dest = jnp.pad(dest, ((0, tail), (0, 0)))
        edge_attr = jnp.pad(edge_attr, ((0, tail), (0, 0)))
    e_pad = src.shape[0]
    rows = e_pad // pack
    src_p = src.reshape(rows, pack * fn)
    dest_p = dest.reshape(rows, pack * fn)
    edge_p = edge_attr.reshape(rows, pack * fe)

    # ---- tiling --------------------------------------------------------------
    # Target ~tile_e edges per grid step, but keep >= min_grid_steps steps for
    # large problems so the "parallel" edge axis shards across both TensorCores
    # on v7x and the DMA pipeline overlaps compute.  The ragged last step is
    # handled by Pallas' partial-block masking (no padding, no output slice).
    row_align = 16  # sublane alignment safe for f32 (8) and bf16 (16) blocks
    tile_p_cap = max(row_align, (tile_e // pack) // row_align * row_align)
    tile_p = max(row_align,
                 min(tile_p_cap, _round_up(_cdiv(rows, min_grid_steps), row_align)))
    grid_n = _cdiv(rows, tile_p)
    d_in_packed = pack * (2 * fn + fe)

    out_p = pl.pallas_call(
        edge_mlp_kernel,
        out_shape=jax.ShapeDtypeStruct((rows, pack * d_out), out_dtype),
        grid_spec=pltpu.PrefetchScalarGridSpec(
            num_scalar_prefetch=0,
            grid=(grid_n,),
            in_specs=[
                pl.BlockSpec((tile_p, pack * fn), lambda i: (i, 0)),          # src tile
                pl.BlockSpec((tile_p, pack * fn), lambda i: (i, 0)),          # dest tile
                pl.BlockSpec((tile_p, pack * fe), lambda i: (i, 0)),          # edge tile
                pl.BlockSpec((d_in_packed, pack * hidden), lambda i: (0, 0)),  # fused W1 (resident)
                pl.BlockSpec((1, pack * hidden), lambda i: (0, 0)),            # b1
                pl.BlockSpec((pack * hidden, pack * d_out), lambda i: (0, 0)),  # W2 (resident)
                pl.BlockSpec((1, pack * d_out), lambda i: (0, 0)),             # b2
            ],
            out_specs=pl.BlockSpec((tile_p, pack * d_out), lambda i: (i, 0)),
            scratch_shapes=[pltpu.VMEM((tile_p, d_in_packed), mm_dt)],
        ),
        compiler_params=pltpu.CompilerParams(
            # Edge axis is embarrassingly parallel -> shards across TCs on v7x.
            dimension_semantics=("parallel",),
            vmem_limit_bytes=vmem_limit_bytes),
    )(src_p, dest_p, edge_p, prepared["w1"], prepared["b1"],
      prepared["w2"], prepared["b2"])

    out = out_p.reshape(e_pad, d_out)   # free contiguous reshape back to rows
    return out if e_pad == E else out[:E]


def init_params(key, num_node_features, num_edge_features, out_features,
                hidden=128, dtype=jnp.float32):
    d_in = 2 * num_node_features + num_edge_features
    k1, k2, k3, k4 = jax.random.split(key, 4)
    lim1 = 1.0 / (d_in ** 0.5)
    lim2 = 1.0 / (hidden ** 0.5)
    return {
        "w1": jax.random.uniform(k1, (d_in, hidden), dtype, -lim1, lim1),
        "b1": jax.random.uniform(k2, (hidden,), dtype, -lim1, lim1),
        "w2": jax.random.uniform(k3, (hidden, out_features), dtype, -lim2, lim2),
        "b2": jax.random.uniform(k4, (out_features,), dtype, -lim2, lim2),
    }


def reference_forward(src, dest, edge_attr, params):
    x = jnp.concatenate([src, dest, edge_attr], axis=1)
    h = x @ params["w1"] + params["b1"]
    h = jnp.where(h > 0, h, jnp.expm1(h))        # ELU, alpha=1
    return h @ params["w2"] + params["b2"]


if __name__ == "__main__":
    key = jax.random.PRNGKey(0)
    num_node_features = 8
    num_edge_features = 16
    out_features = 32
    num_edges = 256

    k_param, k_src, k_dst, k_edge = jax.random.split(key, 4)
    params = init_params(k_param, num_node_features, num_edge_features, out_features)

    src = jax.random.normal(k_src, (num_edges, num_node_features), jnp.float32)
    dest = jax.random.normal(k_dst, (num_edges, num_node_features), jnp.float32)
    edge_attr = jax.random.normal(k_edge, (num_edges, num_edge_features), jnp.float32)
    u = None      # unused by EdgeModel.forward
    batch = None  # unused by EdgeModel.forward

    ref = reference_forward(src, dest, edge_attr, params)

    # Weights prepared once per parameter set (hoisted out of the forward path).
    prep_f32 = prepare_params(params, num_node_features, matmul_dtype=jnp.float32)
    prep_bf16 = prepare_params(params, num_node_features)  # bf16 MXU default

    # Exact-f32 MXU path.
    out_f32 = edge_model_forward(src, dest, edge_attr, u, batch, prepared=prep_f32)
    out_f32 = jax.block_until_ready(out_f32)
    assert out_f32.shape == (num_edges, out_features)
    assert jnp.allclose(out_f32, ref, atol=1e-4, rtol=1e-4), "f32 kernel mismatch"

    # Default mixed-precision path (bf16 MXU operands, f32 accumulation).
    out_bf16 = edge_model_forward(src, dest, edge_attr, u, batch, prepared=prep_bf16)
    out_bf16 = jax.block_until_ready(out_bf16)
    assert out_bf16.shape == (num_edges, out_features)
    assert jnp.allclose(out_bf16, ref, atol=5e-2, rtol=5e-2), "bf16 kernel mismatch"

    # Ragged E that is still a multiple of pack -> fully copy-free partial-block path.
    e2 = 200
    out_r = edge_model_forward(src[:e2], dest[:e2], edge_attr[:e2], u, batch,
                               prepared=prep_f32)
    out_r = jax.block_until_ready(out_r)
    assert out_r.shape == (e2, out_features)
    assert jnp.allclose(out_r, ref[:e2], atol=1e-4, rtol=1e-4), "ragged (copy-free) mismatch"

    # Ragged E not a multiple of pack -> tiny tail-pad fallback path.
    e3 = 203
    out_r3 = edge_model_forward(src[:e3], dest[:e3], edge_attr[:e3], u, batch,
                                prepared=prep_f32)
    out_r3 = jax.block_until_ready(out_r3)
    assert out_r3.shape == (e3, out_features)
    assert jnp.allclose(out_r3, ref[:e3], atol=1e-4, rtol=1e-4), "ragged (tail-pad) mismatch"

    # Optional bf16 output dtype (halves output HBM traffic when downstream tolerates it).
    out_b16o = edge_model_forward(src, dest, edge_attr, u, batch,
                                  prepared=prep_bf16, out_dtype=jnp.bfloat16)
    out_b16o = jax.block_until_ready(out_b16o)
    assert out_b16o.dtype == jnp.bfloat16 and out_b16o.shape == (num_edges, out_features)
    assert jnp.allclose(out_b16o.astype(jnp.float32), ref, atol=1e-1, rtol=1e-1), \
        "bf16-output kernel mismatch"

    print("KERNEL_OK")
</pallas_src>

<mosaic_0001>
module attributes {stable_mosaic.version = 11 : i64} {
  func.func @edge_mlp_kernel(%arg0: i32, %arg1: memref<16x32xf32, #tpu.memory_space<vmem>>, %arg2: memref<16x32xf32, #tpu.memory_space<vmem>>, %arg3: memref<16x64xf32, #tpu.memory_space<vmem>>, %arg4: memref<128x512xf32, #tpu.memory_space<vmem>>, %arg5: memref<1x512xf32, #tpu.memory_space<vmem>>, %arg6: memref<512x128xf32, #tpu.memory_space<vmem>>, %arg7: memref<1x128xf32, #tpu.memory_space<vmem>>, %arg8: memref<16x128xf32, #tpu.memory_space<vmem>>, %arg9: memref<16x128xf32, #tpu.memory_space<vmem>>) attributes {dimension_semantics = [#tpu.dimension_semantics<parallel>], iteration_bounds = array<i64: 4>, scalar_prefetch = 0 : i64, scratch_operands = 1 : i64, tpu.core_type = #tpu.core_type<tc>, window_params = [{transform_indices = @transform_0, window_bounds = array<i64: 16, 32>}, {transform_indices = @transform_1, window_bounds = array<i64: 16, 32>}, {transform_indices = @transform_2, window_bounds = array<i64: 16, 64>}, {pipeline_mode = #tpu.pipeline_mode<synchronous>, transform_indices = @transform_3, window_bounds = array<i64: 128, 512>}, {pipeline_mode = #tpu.pipeline_mode<synchronous>, transform_indices = @transform_4, window_bounds = array<i64: 1, 512>}, {pipeline_mode = #tpu.pipeline_mode<synchronous>, transform_indices = @transform_5, window_bounds = array<i64: 512, 128>}, {pipeline_mode = #tpu.pipeline_mode<synchronous>, transform_indices = @transform_6, window_bounds = array<i64: 1, 128>}, {transform_indices = @transform_7, window_bounds = array<i64: 16, 128>}]} {
    %c0 = arith.constant 0 : index
    %c0_0 = arith.constant 0 : index
    %0 = vector.load %arg1[%c0, %c0_0] : memref<16x32xf32, #tpu.memory_space<vmem>>, vector<16x32xf32>
    %c0_1 = arith.constant 0 : index
    %c0_2 = arith.constant 0 : index
    %1 = vector.load %arg9[%c0_1, %c0_2] : memref<16x128xf32, #tpu.memory_space<vmem>>, vector<16x32xf32>
    tpu.vector_store %arg9[%c0_1, %c0_2], %0 {strides = array<i32>} : memref<16x128xf32, #tpu.memory_space<vmem>>, vector<16x32xf32>,
    %c0_3 = arith.constant 0 : index
    %c0_4 = arith.constant 0 : index
    %2 = vector.load %arg2[%c0_3, %c0_4] : memref<16x32xf32, #tpu.memory_space<vmem>>, vector<16x32xf32>
    %c0_5 = arith.constant 0 : index
    %c32 = arith.constant 32 : index
    %3 = vector.load %arg9[%c0_5, %c32] : memref<16x128xf32, #tpu.memory_space<vmem>>, vector<16x32xf32>
    tpu.vector_store %arg9[%c0_5, %c32], %2 {strides = array<i32>} : memref<16x128xf32, #tpu.memory_space<vmem>>, vector<16x32xf32>,
    %c0_6 = arith.constant 0 : index
    %c0_7 = arith.constant 0 : index
    %4 = vector.load %arg3[%c0_6, %c0_7] : memref<16x64xf32, #tpu.memory_space<vmem>>, vector<16x64xf32>
    %c0_8 = arith.constant 0 : index
    %c64 = arith.constant 64 : index
    %5 = vector.load %arg9[%c0_8, %c64] : memref<16x128xf32, #tpu.memory_space<vmem>>, vector<16x64xf32>
    tpu.vector_store %arg9[%c0_8, %c64], %4 {strides = array<i32>} : memref<16x128xf32, #tpu.memory_space<vmem>>, vector<16x64xf32>,
    %c0_9 = arith.constant 0 : index
    %c0_10 = arith.constant 0 : index
    %6 = vector.load %arg9[%c0_9, %c0_10] : memref<16x128xf32, #tpu.memory_space<vmem>>, vector<16x128xf32>
    %c0_11 = arith.constant 0 : index
    %c0_12 = arith.constant 0 : index
    %7 = vector.load %arg4[%c0_11, %c0_12] : memref<128x512xf32, #tpu.memory_space<vmem>>, vector<128x512xf32>
    %cst = arith.constant dense<0.000000e+00> : vector<16x512xf32>
    %8 = tpu.matmul %6, %7, %cst {dimension_numbers = #tpu.dot_dimension_numbers<[1], [0], [0], [1], [0, 0, 1, 1], [], []>} : vector<16x128xf32>, vector<128x512xf32>, vector<16x512xf32> -> vector<16x512xf32>
    %c0_13 = arith.constant 0 : index
    %c0_14 = arith.constant 0 : index
    %9 = vector.load %arg5[%c0_13, %c0_14] : memref<1x512xf32, #tpu.memory_space<vmem>>, vector<1x512xf32>
    %10 = vector.broadcast %9 : vector<1x512xf32> to vector<16x512xf32>
    %11 = arith.addf %8, %10 : vector<16x512xf32>
    %cst_15 = arith.constant 0.000000e+00 : f32
    %12 = vector.broadcast %cst_15 : f32 to vector<16x512xf32>
    %13 = arith.cmpf ogt, %11, %12 : vector<16x512xf32>
    %14 = math.exp %11 : vector<16x512xf32>
    %cst_16 = arith.constant 1.000000e+00 : f32
    %15 = vector.broadcast %cst_16 : f32 to vector<16x512xf32>
    %16 = arith.subf %14, %15 : vector<16x512xf32>
    %17 = arith.select %13, %11, %16 : vector<16x512xi1>, vector<16x512xf32>
    %c0_17 = arith.constant 0 : index
    %c0_18 = arith.constant 0 : index
    %18 = vector.load %arg6[%c0_17, %c0_18] : memref<512x128xf32, #tpu.memory_space<vmem>>, vector<512x128xf32>
    %cst_19 = arith.constant dense<0.000000e+00> : vector<16x128xf32>
    %19 = tpu.matmul %17, %18, %cst_19 {dimension_numbers = #tpu.dot_dimension_numbers<[1], [0], [0], [1], [0, 0, 1, 1], [], []>} : vector<16x512xf32>, vector<512x128xf32>, vector<16x128xf32> -> vector<16x128xf32>
    %c0_20 = arith.constant 0 : index
    %c0_21 = arith.constant 0 : index
    %20 = vector.load %arg7[%c0_20, %c0_21] : memref<1x128xf32, #tpu.memory_space<vmem>>, vector<1x128xf32>
    %21 = vector.broadcast %20 : vector<1x128xf32> to vector<16x128xf32>
    %22 = arith.addf %19, %21 : vector<16x128xf32>
    %c0_22 = arith.constant 0 : index
    %c0_23 = arith.constant 0 : index
    %23 = vector.load %arg8[%c0_22, %c0_23] : memref<16x128xf32, #tpu.memory_space<vmem>>, vector<16x128xf32>
    tpu.vector_store %arg8[%c0_22, %c0_23], %22 {strides = array<i32>} : memref<16x128xf32, #tpu.memory_space<vmem>>, vector<16x128xf32>,
    return
  }
  func.func @transform_0(%arg0: i32) -> (i32, i32) {
    %c0_i32 = arith.constant 0 : i32
    %c0_i32_0 = arith.constant 0 : i32
    return %arg0, %c0_i32 : i32, i32
  }
  func.func @transform_1(%arg0: i32) -> (i32, i32) {
    %c0_i32 = arith.constant 0 : i32
    %c0_i32_0 = arith.constant 0 : i32
    return %arg0, %c0_i32 : i32, i32
  }
  func.func @transform_2(%arg0: i32) -> (i32, i32) {
    %c0_i32 = arith.constant 0 : i32
    %c0_i32_0 = arith.constant 0 : i32
    return %arg0, %c0_i32 : i32, i32
  }
  func.func @transform_3(%arg0: i32) -> (i32, i32) {
    %c0_i32 = arith.constant 0 : i32
    %c0_i32_0 = arith.constant 0 : i32
    %c0_i32_1 = arith.constant 0 : i32
    return %c0_i32, %c0_i32_0 : i32, i32
  }
  func.func @transform_4(%arg0: i32) -> (i32, i32) {
    %c0_i32 = arith.constant 0 : i32
    %c0_i32_0 = arith.constant 0 : i32
    %c0_i32_1 = arith.constant 0 : i32
    return %c0_i32, %c0_i32_0 : i32, i32
  }
  func.func @transform_5(%arg0: i32) -> (i32, i32) {
    %c0_i32 = arith.constant 0 : i32
    %c0_i32_0 = arith.constant 0 : i32
    %c0_i32_1 = arith.constant 0 : i32
    return %c0_i32, %c0_i32_0 : i32, i32
  }
  func.func @transform_6(%arg0: i32) -> (i32, i32) {
    %c0_i32 = arith.constant 0 : i32
    %c0_i32_0 = arith.constant 0 : i32
    %c0_i32_1 = arith.constant 0 : i32
    return %c0_i32, %c0_i32_0 : i32, i32
  }
  func.func @transform_7(%arg0: i32) -> (i32, i32) {
    %c0_i32 = arith.constant 0 : i32
    %c0_i32_0 = arith.constant 0 : i32
    return %arg0, %c0_i32 : i32, i32
  }
}

</mosaic_0001>

<bundles_post_ra>
// kernel: tpu_custom_call.1
= control target key start
LH: loop header
LB: loop body
LE: loop exit
PB: predicated region body
PF: predicated region fallthrough
CT: control target
= control target key end

     0   :  { %12 = vsyncpa [#allocation4], 0  ;;  %s1701_s0 = inlined_call_operand.vmem [shape: f32[64,32], index: 0, kind: input, shape index: {}]   ;;  %s1702_s1 = inlined_call_operand.vmem [shape: f32[64,32], index: 1, kind: input, shape index: {}]   ;;  %s1703_s2 = inlined_call_operand.vmem [shape: f32[64,64], index: 2, kind: input, shape index: {}]   ;;  %s1704_s3 = inlined_call_operand.hbm [shape: f32[128,512], index: 3, kind: input, shape index: {}]   ;;  %s1705_s4 = inlined_call_operand.vmem [shape: f32[1,512], index: 4, kind: input, shape index: {}]   ;;  %s1706_s5 = inlined_call_operand.hbm [shape: f32[512,128], index: 5, kind: input, shape index: {}]   ;;  %s1707_s6 = inlined_call_operand.vmem [shape: f32[1,128], index: 6, kind: input, shape index: {}]   ;;  %s1708_s7 = inlined_call_operand.hbm [shape: f32[64,128], index: 7, kind: output, shape index: {}]  }
   0x1   :  { %13 = vsyncpa [#allocation7], 0 }
   0x2   :  { %14 = vsyncpa [#allocation5], 0 }
   0x3   :  { %16 = vsyncpa [#allocation5 + $0x1], 0  ;;  %s1511_s24 = smov 0   ;;  %s1513_s25 = smov 0  }
   0x4   :  { %s1515_s26 = smov 0   ;;  %s1517_s27 = smov 0  }
   0x5 LB: > { %s1532_s28 = sadd.s32 4294967295, %s1457_s27   ;;  %s1012_s29 = sadd.s32 4294967294, %s1457_s27   ;;  %s1457_s27 = sphi %s1517_s27, %s1728_s27   ;;  %s1453_s26 = sphi %s1515_s26, %s1727_s26   ;;  %s1449_s25 = sphi %s1513_s25, %s1726_s25   ;;  %s1445_s24 = sphi %s1511_s24, %s1725_s24  }
   0x6   : > { %s1536_s30 = sadd.s32 1, %s1457_s27   ;;  %s191_s8 = sadd.s32 1, %s1453_s26 }
   0x7   : > { %s188_s9 = ssub.s32 %s1457_s27, %s1536_s30  ;;  %p201_p0 = scmp.ne.s32.totalorder %s1453_s26, %s1449_s25 }
   0x8   : > { %p189_p1 = scmp.eq.s32.totalorder %s188_s9, 0  ;;  %p202_p2 = scmp.eq.s32.totalorder %s1532_s28, 3 }
   0x9   : > { %p207_p3 = scmp.ne.s32.totalorder %s1449_s25, %s1445_s24  ;;  %p208_p4 = scmp.eq.s32.totalorder %s1012_s29, 3 }
   0xa   : > { %s1547_s10 = scalar_select %p189_p1, %s1453_s26, %s191_s8  }
   0xb   : > { %p1549_p5 = por %p202_p2, %p201_p0  ;;  %p1553_p6 = por %p208_p4, %p207_p3 }
   0xc   : > { %1712 = sst [smem:[#allocation12_spill]] %s1547_s10  ;;  %p1013_p7 = scmp.ge.s32.totalorder %s1457_s27, 1 }
   0xd   : > { %s1713_s11 = scalar_select %p1549_p5, 1, 0 }
   0xe   : > { %s1714_s12 = scalar_select %p1553_p6, 1, 0 }
   0xf   : > { %p215_p8 = scmp.lt.s32.totalorder %s1457_s27, 5  ;;  %p1709_p9 = scmp.eq.s32.totalorder %s1532_s28, 0 }
  0x10   : > { %s1459_s14 = smov [#allocation3]   ;;  %s1460_s17 = smov [#allocation6]  }
  0x11   : > { %p1560_p10 = pnand %p1013_p7, %p215_p8  ;;  %s227_s15 = sshll.u32 %s1459_s14, 4  ;;  %s228_s15 = int_to_ptr.vmem [resolvable:$true] %s227_s15 }
  0x12   : > { %s243_s18 = sshll.u32 %s1460_s17, 4  ;;  %s1331_s21 = scalar_lea.hbm %s1704_s3, 8192  ;;  %s1572_s18 = int_to_ptr.vmem [resolvable:$true] %s243_s18 }
  0x13   : > { %s1715_s13 = scalar_select %p1560_p10, 1, 0 }
  0x14   : > { %p1256_p11 = pneg %p1560_p10  ;;  %p1332_p13 = scmp.ne.s32.totalorder %s1704_s3, %s1331_s21 }
  0x15   : > { %p1338_p3 = scmp.lt.u32.totalorder %s1331_s21, %s1704_s3 }
  0x16   : > { %p1568_p12 = pnand %p1709_p9, %p1256_p11 }
  0x18   : > { %p1333_p0 = pneg %p1568_p12 }
  0x1a   : > { %p1334_p1 = pnand %p1333_p0, %p1332_p13 }
  0x1c   : > { %p1335_p2 = pneg %p1334_p1 }
  0x1e   : > { %p1340_p4 = pnand %p1338_p3, %p1335_p2 }
  0x20   : > { %1343 = shalt.err (!%p1340_p4)
}
  0x21   : > { %s1344_s9 = scalar_lea.vmem %s228_s15, 8192  ;;  %p1352_p9 = scmp.lt.s32.totalorder %s228_s15, %s228_s15 }
  0x22   : > { %p1345_p7 = scmp.ne.s32.totalorder %s228_s15, %s1344_s9  ;;  %p1353_p6 = scmp.lt.s32.totalorder %s1344_s9, %s1344_s9 }
  0x24   : > { %p1347_p8 = pnand %p1345_p7, %p1333_p0  ;;  %p1354_p5 = por %p1353_p6, %p1352_p9 }
  0x26   : > { %p1348_p11 = pneg %p1347_p8 }
  0x28   : > { %p1355_p10 = pnand %p1354_p5, %p1348_p11 }
  0x2a   : > { %1358 = shalt.err (!%p1355_p10)
}
  0x2b   : > { %s1461_s14 = smov 512   ;;  %s1462_s17 = smov 32  }
  0x2c   : > { %1259 = dma.hbm_to_vmem [thread:$0]  (!%p1568_p12), %s1704_s3, 8192, %s228_s15, [#allocation4], %s1461_s14, %s1461_s14, %s1462_s17  }
  0x2d   : > { %s1359_s23 = scalar_lea.hbm %s1706_s5, 8192 }
  0x2e   : > { %p1360_p13 = scmp.ne.s32.totalorder %s1706_s5, %s1359_s23  ;;  %p1366_p9 = scmp.lt.u32.totalorder %s1359_s23, %s1706_s5 }
  0x30   : > { %p1362_p5 = pnand %p1360_p13, %p1333_p0 }
  0x32   : > { %p1363_p6 = pneg %p1362_p5 }
  0x34   : > { %p1368_p10 = pnand %p1366_p9, %p1363_p6 }
  0x36   : > { %1371 = shalt.err (!%p1368_p10)
}
  0x37   : > { %s1372_s15 = scalar_lea.vmem %s1572_s18, 8192  ;;  %p1380_p4 = scmp.lt.s32.totalorder %s1572_s18, %s1572_s18 }
  0x38   : > { %p1373_p1 = scmp.ne.s32.totalorder %s1572_s18, %s1372_s15  ;;  %p1381_p7 = scmp.lt.s32.totalorder %s1372_s15, %s1372_s15 }
  0x3a   : > { %p1375_p2 = pnand %p1373_p1, %p1333_p0  ;;  %p1382_p8 = por %p1381_p7, %p1380_p4 }
  0x3c   : > { %p1376_p3 = pneg %p1375_p2 }
  0x3e   : > { %p1383_p11 = pnand %p1382_p8, %p1376_p3 }
  0x40   : > { %1386 = shalt.err (!%p1383_p11)
}
  0x41   : > { %s1463_s10 = smov 128   ;;  %s1464_s14 = smov 8  }
  0x42   : > { %1262 = dma.hbm_to_vmem [thread:$0]  (!%p1568_p12), %s1706_s5, 8192, %s1572_s18, [#allocation7], %s1463_s10, %s1463_s10, %s1464_s14  }
  0x43   : > { %p1717_p13 = scmp.ne.s32.totalorder %s1715_s13, 0 }
  0x44   : > { %p1718_p0 = scmp.eq.s32.totalorder (!%p1717_p13), %s1532_s28, 0 }
  0x45   : > { %289 = sbr.rel (%p1717_p13) target bundleno = 685 (0x2ad), region = 48 }
  0x4c   : > { %1432 = dma.done.wait (%p1718_p0), [#allocation4], 8192   ;;  %p1719_p5 = pmov %p1718_p0 }
  0x4d   : > { %p1720_p6 = pmov %p1718_p0 }
  0x4e   : > { %1434 = vsyncadd (%p1719_p5), [#allocation4], 4294959104 }
  0x4f   : > { %1436 = dma.done.wait (%p1720_p6), [#allocation7], 8192   ;;  %p1721_p9 = pmov %p1718_p0 }
  0x50   : > { %s1021_s16 = sshll.u32 %s1532_s28, 1  ;;  %v1465_v0 = vmov 0.0   ;;  %vm356_vm0 = vcmask 261120   ;;  %s1466_s10 = smov 32   ;;  %v388_v7 = vld [vmem:[#allocation3 + $0x8] sm:$0xff]  ;;  %v390_v9 = vld [vmem:[#allocation3 + $0x18] sm:$0xff] }
  0x51   : > { %1438 = vsyncadd (%p1721_p9), [#allocation7], 4294959104  ;;  %p336_p10 = scmp.lt.s32.totalorder %s1021_s16, 7  ;;  %537 = vmatprep.mubr.f32.mxu0 %v1465_v0  ;;  %614 = vmatprep.mubr.f32.mxu1 %v1465_v0  ;;  %v392_v8 = vld [vmem:[#allocation3 + $0x28] sm:$0xff]  ;;  %v394_v11 = vld [vmem:[#allocation3 + $0x38] sm:$0xff]  ;;  %s1467_s14 = smov 64  }
  0x52   : > { %v1118_v10 = vpack.c.bf16 %v392_v8, %v388_v7  ;;  %v387_v12 = vld [vmem:[#allocation3] sm:$0xff]  ;;  %v1150_v14 = vpack.c.bf16 %v394_v11, %v390_v9  ;;  %v389_v16 = vld [vmem:[#allocation3 + $0x10] sm:$0xff]  ;;  %v396_v18 = vld [vmem:[#allocation3 + $0x48] sm:$0xff]  ;;  %vm369_vm1 = vcmask 523520   ;;  %vm382_vm2 = vcmask 1048064   ;;  %s1041_s23 = sshll.u32 %s1532_s28, 8 }
  0x53   : > { %s1730_s16 = smov (!%p336_p10, %s1021_s16), 7  ;;  %v391_v13 = vld [vmem:[#allocation3 + $0x20] sm:$0xff]  ;;  %v393_v17 = vld [vmem:[#allocation3 + $0x30] sm:$0xff]  ;;  %v400_v20 = vld [vmem:[#allocation3 + $0x68] sm:$0xff]  ;;  %s1658_s9 = scalar_lea.hbm %s1708_s7, %s1041_s23 }
  0x54   : > { %s1022_s13 = sshll.u32 %s1730_s16, 3  ;;  %v1120_v15 = vpack.c.bf16 %v391_v13, %v387_v12  ;;  %1119 = vmatprep.subr.bf16.mxu0 %v1118_v10  ;;  %v1152_v19 = vpack.c.bf16 %v393_v17, %v389_v16  ;;  %v398_v21 = vld [vmem:[#allocation3 + $0x58] sm:$0xff]  ;;  %1151 = vmatprep.subr.bf16.mxu1 %v1150_v14  ;;  %v1122_v23 = vpack.c.bf16 %v400_v20, %v396_v18  ;;  %v395_v25 = vld [vmem:[#allocation3 + $0x40] sm:$0xff]  ;;  %v397_v27 = vld [vmem:[#allocation3 + $0x50] sm:$0xff]  ;;  %s332_s16 = sand.u32 1, %s1449_s25  }
  0x55   : > { %s339_s21 = scalar_lea.vmem %s1701_s0, %s1022_s13  ;;  %s345_s29 = scalar_lea.vmem %s1702_s1, %s1022_s13  ;;  %v402_v22 = vld [vmem:[#allocation3 + $0x78] sm:$0xff]  ;;  %v399_v26 = vld [vmem:[#allocation3 + $0x60] sm:$0xff]  ;;  %v401_v29 = vld [vmem:[#allocation3 + $0x70] sm:$0xff] }
  0x56   : > { %v359_v1 = vld [vmem:[%s345_s29] sm:$0xff]  ;;  %v355_v3 = vld [vmem:[%s339_s21 + $0x8] sm:$0xff]  ;;  %s351_s15 = scalar_lea.vmem %s1703_s2, %s1022_s13  ;;  %v1154_v24 = vpack.c.bf16 %v402_v22, %v398_v21  ;;  %1121 = vmatpush1.bf16.msra.mxu0 %v1120_v15  ;;  %1153 = vmatpush1.bf16.msra.mxu1 %v1152_v19  ;;  %v1124_v28 = vpack.c.bf16 %v399_v26, %v395_v25  ;;  %v404_v30 = vld [vmem:[#allocation3 + $0x88] sm:$0xff]  ;;  %v1156_v32 = vpack.c.bf16 %v401_v29, %v397_v27  ;;  %s1020_s20 = sshll.u32 %s332_s16, 4 }
  0x57   : > { %v354_v2 = vld [vmem:[%s339_s21] sm:$0xff]  ;;  %363 = vrot.lane.b32.xlu0 %v359_v1, %s1466_s10  ;;  %v360_v4 = vld [vmem:[%s345_s29 + $0x8] sm:$0xff]  ;;  %358 = vst.msk [vmem:[#allocation2 + $0x8] sm:$0xff] %vm356_vm0, %v355_v3  ;;  %v408_v31 = vld [vmem:[#allocation3 + $0xa8] sm:$0xff]  ;;  %1123 = vmatprep.subr.bf16.mxu0 %v1122_v23  ;;  %s334_s21 = scalar_lea.vmem [#allocation8], %s1020_s20  ;;  %p1722_p1 = scmp.ne.s32.totalorder %s1713_s11, 0 }
  0x58   : > { %v372_v5 = vld [vmem:[%s351_s15] sm:$0xff]  ;;  %v373_v6 = vld [vmem:[%s351_s15 + $0x8] sm:$0xff]  ;;  %357 = vst.msk [vmem:[#allocation2] sm:$0xff] %vm356_vm0, %v354_v2  ;;  %365 = vrot.lane.b32.xlu1 %v360_v4, %s1466_s10  ;;  %1155 = vmatprep.subr.bf16.mxu1 %v1154_v24  ;;  %v1126_v33 = vpack.c.bf16 %v408_v31, %v404_v30  ;;  %v403_v36 = vld [vmem:[#allocation3 + $0x80] sm:$0xff]  ;;  %s904_s22 = sshll.u32 %s334_s21, 4  ;;  %s1660_s15 = scalar_lea.sflag [#allocation5], %s332_s16  ;;  %s1653_s22 = int_to_ptr.vmem [resolvable:$true] %s904_s22 }
  0x59   : > { %v406_v34 = vld [vmem:[#allocation3 + $0x98] sm:$0xff]  ;;  %v407_v38 = vld [vmem:[#allocation3 + $0xa0] sm:$0xff]  ;;  %v405_v39 = vld [vmem:[#allocation3 + $0x90] sm:$0xff]  ;;  %s1387_s10 = scalar_lea.vmem %s1653_s22, 256  ;;  %s1468_s28 = smov [#allocation8]  }
  0x5a   : > { %v410_v35 = vld [vmem:[#allocation3 + $0xb8] sm:$0xff]  ;;  %v409_v40 = vld [vmem:[#allocation3 + $0xb0] sm:$0xff]  ;;  %v412_v41 = vld [vmem:[#allocation3 + $0xc8] sm:$0xff]  ;;  %1125 = vmatpush1.bf16.msra.mxu0 %v1124_v28  ;;  %1157 = vmatpush1.bf16.msra.mxu1 %v1156_v32  ;;  %v1128_v44 = vpack.c.bf16 %v407_v38, %v403_v36  ;;  %p1388_p12 = scmp.ne.s32.totalorder %s1653_s22, %s1387_s10 }
  0x5b   : > { %376 = vrot.lane.b32.xlu0 %v372_v5, %s1467_s14  ;;  %v1158_v37 = vpack.c.bf16 %v410_v35, %v406_v34  ;;  %v416_v42 = vld [vmem:[#allocation3 + $0xe8] sm:$0xff]  ;;  %v414_v43 = vld [vmem:[#allocation3 + $0xd8] sm:$0xff]  ;;  %v1160_v45 = vpack.c.bf16 %v409_v40, %v405_v39  ;;  %v411_v47 = vld [vmem:[#allocation3 + $0xc0] sm:$0xff]  ;;  %1127 = vmatprep.subr.bf16.mxu0 %v1126_v33 }
  0x5c   : > { %378 = vrot.lane.b32.xlu1 %v373_v6, %s1467_s14  ;;  %v418_v46 = vld [vmem:[#allocation3 + $0xf8] sm:$0xff]  ;;  %v415_v48 = vld [vmem:[#allocation3 + $0xe0] sm:$0xff]  ;;  %v1130_v49 = vpack.c.bf16 %v416_v42, %v412_v41  ;;  %v413_v51 = vld [vmem:[#allocation3 + $0xd0] sm:$0xff]  ;;  %p1389_p2 = pnand %p1388_p12, %p1722_p1  ;;  %s1391_s14 = sshll.u32 %s1468_s28, 4  ;;  %s1392_s14 = int_to_ptr.vmem [resolvable:$false] %s1391_s14 }
  0x5d   : > { %1159 = vmatprep.subr.bf16.mxu1 %v1158_v37  ;;  %v1162_v50 = vpack.c.bf16 %v418_v46, %v414_v43  ;;  %v417_v52 = vld [vmem:[#allocation3 + $0xf0] sm:$0xff]  ;;  %v420_v53 = vld [vmem:[#allocation3 + $0x108] sm:$0xff]  ;;  %v422_v55 = vld [vmem:[#allocation3 + $0x118] sm:$0xff]  ;;  %v1132_v57 = vpack.c.bf16 %v415_v48, %v411_v47  ;;  %s1393_s17 = scalar_lea.vmem %s1392_s14, 512  ;;  %p1394_p4 = scmp.lt.s32.totalorder %s1653_s22, %s1392_s14 }
  0x5e   : > { %v424_v54 = vld [vmem:[#allocation3 + $0x128] sm:$0xff]  ;;  %v426_v56 = vld [vmem:[#allocation3 + $0x138] sm:$0xff]  ;;  %1129 = vmatpush1.bf16.msra.mxu0 %v1128_v44  ;;  %1161 = vmatpush1.bf16.msra.mxu1 %v1160_v45  ;;  %v1164_v58 = vpack.c.bf16 %v417_v52, %v413_v51  ;;  %v419_v59 = vld [vmem:[#allocation3 + $0x100] sm:$0xff]  ;;  %p1390_p3 = pneg %p1389_p2  ;;  %p1395_p7 = scmp.lt.s32.totalorder %s1393_s17, %s1387_s10 }
  0x5f   : > { %v423_v60 = vld [vmem:[#allocation3 + $0x120] sm:$0xff]  ;;  %1131 = vmatprep.subr.bf16.mxu0 %v1130_v49  ;;  %1163 = vmatprep.subr.bf16.mxu1 %v1162_v50  ;;  %v1134_v61 = vpack.c.bf16 %v424_v54, %v420_v53  ;;  %v1166_v62 = vpack.c.bf16 %v426_v56, %v422_v55  ;;  %v421_v63 = vld [vmem:[#allocation3 + $0x110] sm:$0xff]  ;;  %v428_v2 = vld [vmem:[#allocation3 + $0x148] sm:$0xff] }
  0x60   : > { %v425_v1 = vld [vmem:[#allocation3 + $0x130] sm:$0xff]  ;;  %v432_v3 = vld [vmem:[#allocation3 + $0x168] sm:$0xff]  ;;  %v430_v4 = vld [vmem:[#allocation3 + $0x158] sm:$0xff]  ;;  %v1136_v6 = vpack.c.bf16 %v423_v60, %v419_v59  ;;  %p1396_p8 = por %p1395_p7, %p1394_p4 }
  0x61   : > { %v434_v5 = vld [vmem:[#allocation3 + $0x178] sm:$0xff]  ;;  %v1168_v7 = vpack.c.bf16 %v425_v1, %v421_v63  ;;  %v427_v8 = vld [vmem:[#allocation3 + $0x140] sm:$0xff]  ;;  %v1138_v10 = vpack.c.bf16 %v432_v3, %v428_v2  ;;  %v429_v12 = vld [vmem:[#allocation3 + $0x150] sm:$0xff] }
  0x62   : > { %1133 = vmatpush1.bf16.msra.mxu0 %v1132_v57  ;;  %1165 = vmatpush1.bf16.msra.mxu1 %v1164_v58  ;;  %v431_v9 = vld [vmem:[#allocation3 + $0x160] sm:$0xff]  ;;  %v1170_v11 = vpack.c.bf16 %v434_v5, %v430_v4  ;;  %v433_v13 = vld [vmem:[#allocation3 + $0x170] sm:$0xff]  ;;  %v436_v14 = vld [vmem:[#allocation3 + $0x188] sm:$0xff]  ;;  %p1397_p11 = pnand %p1396_p8, %p1390_p3 }
  0x63   : > { %1135 = vmatprep.subr.bf16.mxu0 %v1134_v61  ;;  %1167 = vmatprep.subr.bf16.mxu1 %v1166_v62  ;;  %v440_v15 = vld [vmem:[#allocation3 + $0x1a8] sm:$0xff]  ;;  %v438_v16 = vld [vmem:[#allocation3 + $0x198] sm:$0xff]  ;;  %v1140_v18 = vpack.c.bf16 %v431_v9, %v427_v8  ;;  %v1172_v19 = vpack.c.bf16 %v433_v13, %v429_v12  ;;  %v435_v20 = vld [vmem:[#allocation3 + $0x180] sm:$0xff] }
  0x64   : > { %v442_v17 = vld [vmem:[#allocation3 + $0x1b8] sm:$0xff]  ;;  %v439_v21 = vld [vmem:[#allocation3 + $0x1a0] sm:$0xff]  ;;  %v1142_v22 = vpack.c.bf16 %v440_v15, %v436_v14  ;;  %v437_v24 = vld [vmem:[#allocation3 + $0x190] sm:$0xff] }
  0x65   : > { %v1174_v23 = vpack.c.bf16 %v442_v17, %v438_v16  ;;  %v441_v25 = vld [vmem:[#allocation3 + $0x1b0] sm:$0xff]  ;;  %v444_v26 = vld [vmem:[#allocation3 + $0x1c8] sm:$0xff]  ;;  %v446_v28 = vld [vmem:[#allocation3 + $0x1d8] sm:$0xff]  ;;  %v1144_v30 = vpack.c.bf16 %v439_v21, %v435_v20 }
  0x66   : > { %1137 = vmatpush1.bf16.msra.mxu0 %v1136_v6  ;;  %1169 = vmatpush1.bf16.msra.mxu1 %v1168_v7  ;;  %v448_v27 = vld [vmem:[#allocation3 + $0x1e8] sm:$0xff]  ;;  %v450_v29 = vld [vmem:[#allocation3 + $0x1f8] sm:$0xff]  ;;  %v1176_v31 = vpack.c.bf16 %v441_v25, %v437_v24  ;;  %v443_v32 = vld [vmem:[#allocation3 + $0x1c0] sm:$0xff] }
  0x67   : > { %1139 = vmatprep.subr.bf16.mxu0 %v1138_v10  ;;  %1171 = vmatprep.subr.bf16.mxu1 %v1170_v11  ;;  %v447_v33 = vld [vmem:[#allocation3 + $0x1e0] sm:$0xff]  ;;  %v1146_v34 = vpack.c.bf16 %v448_v27, %v444_v26  ;;  %v1178_v35 = vpack.c.bf16 %v450_v29, %v446_v28  ;;  %v445_v36 = vld [vmem:[#allocation3 + $0x1d0] sm:$0xff]  ;;  %v684_v39 = vld [vmem:[#allocation6 + $0x88] sm:$0xff] }
  0x68   : > { %v449_v37 = vld [vmem:[#allocation3 + $0x1f0] sm:$0xff]  ;;  %v683_v38 = vld [vmem:[#allocation6 + $0x80] sm:$0xff]  ;;  %v716_v41 = vld [vmem:[#allocation6 + $0x188] sm:$0xff]  ;;  %v1148_v42 = vpack.c.bf16 %v447_v33, %v443_v32 }
  0x69   : > { %v715_v40 = vld [vmem:[#allocation6 + $0x180] sm:$0xff]  ;;  %v1180_v43 = vpack.c.bf16 %v449_v37, %v445_v36  ;;  %v1182_v44 = vpack.c.bf16 %v684_v39, %v683_v38  ;;  %v668_v51 = vld [vmem:[#allocation6 + $0x8] sm:$0xff]  ;;  %v685_v54 = vld [vmem:[#allocation6 + $0x90] sm:$0xff] }
  0x6a   : > { %1141 = vmatpush1.bf16.msra.mxu0 %v1140_v18  ;;  %1173 = vmatpush1.bf16.msra.mxu1 %v1172_v19  ;;  %v1214_v45 = vpack.c.bf16 %v716_v41, %v715_v40  ;;  %v667_v50 = vld [vmem:[#allocation6] sm:$0xff]  ;;  %v700_v53 = vld [vmem:[#allocation6 + $0x108] sm:$0xff]  ;;  %v686_v55 = vld [vmem:[#allocation6 + $0x98] sm:$0xff] }
  0x6b   : > { %1143 = vmatprep.subr.bf16.mxu0 %v1142_v22  ;;  %1175 = vmatprep.subr.bf16.mxu1 %v1174_v23  ;;  %v699_v52 = vld [vmem:[#allocation6 + $0x100] sm:$0xff]  ;;  %v717_v56 = vld [vmem:[#allocation6 + $0x190] sm:$0xff]  ;;  %v718_v57 = vld [vmem:[#allocation6 + $0x198] sm:$0xff]  ;;  %v1184_v58 = vpack.c.bf16 %v668_v51, %v667_v50  ;;  %v1186_v1 = vpack.c.bf16 %v686_v55, %v685_v54 }
  0x6c   : > { %v1216_v59 = vpack.c.bf16 %v700_v53, %v699_v52  ;;  %v669_v60 = vld [vmem:[#allocation6 + $0x10] sm:$0xff]  ;;  %v670_v61 = vld [vmem:[#allocation6 + $0x18] sm:$0xff]  ;;  %v1218_v2 = vpack.c.bf16 %v718_v57, %v717_v56  ;;  %v687_v4 = vld [vmem:[#allocation6 + $0xa0] sm:$0xff] }
  0x6d   : > { %v701_v62 = vld [vmem:[#allocation6 + $0x110] sm:$0xff]  ;;  %v702_v3 = vld [vmem:[#allocation6 + $0x118] sm:$0xff]  ;;  %v688_v5 = vld [vmem:[#allocation6 + $0xa8] sm:$0xff]  ;;  %v1188_v9 = vpack.c.bf16 %v670_v61, %v669_v60 }
  0x6e   : > { %1145 = vmatpush1.bf16.msra.mxu0 %v1144_v30  ;;  %1177 = vmatpush1.bf16.msra.mxu1 %v1176_v31  ;;  %v719_v6 = vld [vmem:[#allocation6 + $0x1a0] sm:$0xff]  ;;  %v720_v7 = vld [vmem:[#allocation6 + $0x1a8] sm:$0xff]  ;;  %v1220_v10 = vpack.c.bf16 %v702_v3, %v701_v62  ;;  %v1190_v12 = vpack.c.bf16 %v688_v5, %v687_v4  ;;  %v690_v19 = vld [vmem:[#allocation6 + $0xb8] sm:$0xff] }
  0x6f   : > { %1147 = vmatprep.subr.bf16.mxu0 %v1146_v34  ;;  %1179 = vmatprep.subr.bf16.mxu1 %v1178_v35  ;;  %v671_v11 = vld [vmem:[#allocation6 + $0x20] sm:$0xff]  ;;  %v1222_v13 = vpack.c.bf16 %v720_v7, %v719_v6  ;;  %v672_v14 = vld [vmem:[#allocation6 + $0x28] sm:$0xff]  ;;  %v721_v20 = vld [vmem:[#allocation6 + $0x1b0] sm:$0xff] }
  0x70   : > { %v703_v15 = vld [vmem:[#allocation6 + $0x120] sm:$0xff]  ;;  %v704_v16 = vld [vmem:[#allocation6 + $0x128] sm:$0xff]  ;;  %v1192_v17 = vpack.c.bf16 %v672_v14, %v671_v11  ;;  %v722_v22 = vld [vmem:[#allocation6 + $0x1b8] sm:$0xff] }
  0x71   : > { %v1224_v18 = vpack.c.bf16 %v704_v16, %v703_v15  ;;  %v673_v23 = vld [vmem:[#allocation6 + $0x30] sm:$0xff]  ;;  %v674_v24 = vld [vmem:[#allocation6 + $0x38] sm:$0xff]  ;;  %v1226_v25 = vpack.c.bf16 %v722_v22, %v721_v20  ;;  %v691_v30 = vld [vmem:[#allocation6 + $0xc0] sm:$0xff]  ;;  %v453_v15 = vlaneseq }
  0x72   : > { %1149 = vmatpush1.bf16.msra.mxu0 %v1148_v42  ;;  %1181 = vmatpush1.bf16.msra.mxu1 %v1180_v43  ;;  %v1196_v26 = vpack.c.bf16 %v674_v24, %v673_v23  ;;  %v705_v27 = vld [vmem:[#allocation6 + $0x130] sm:$0xff]  ;;  %v706_v28 = vld [vmem:[#allocation6 + $0x138] sm:$0xff]  ;;  %v692_v31 = vld [vmem:[#allocation6 + $0xc8] sm:$0xff] }
  0x73   : > { %1183 = vmatprep.subr.bf16.mxu0 %v1182_v44  ;;  %1215 = vmatprep.subr.bf16.mxu1 %v1214_v45  ;;  %v1228_v29 = vpack.c.bf16 %v706_v28, %v705_v27  ;;  %v723_v32 = vld [vmem:[#allocation6 + $0x1c0] sm:$0xff]  ;;  %v1198_v33 = vpack.c.bf16 %v692_v31, %v691_v30  ;;  %v724_v34 = vld [vmem:[#allocation6 + $0x1c8] sm:$0xff]  ;;  %v693_v42 = vld [vmem:[#allocation6 + $0xd0] sm:$0xff]  ;;  %v454_v16 = vshrl.u32 %v453_v15, 7 }
  0x74   : > { %v675_v35 = vld [vmem:[#allocation6 + $0x40] sm:$0xff]  ;;  %v676_v36 = vld [vmem:[#allocation6 + $0x48] sm:$0xff]  ;;  %v1230_v37 = vpack.c.bf16 %v724_v34, %v723_v32  ;;  %v694_v43 = vld [vmem:[#allocation6 + $0xd8] sm:$0xff] }
  0x75   : > { %v1200_v38 = vpack.c.bf16 %v676_v36, %v675_v35  ;;  %v707_v39 = vld [vmem:[#allocation6 + $0x140] sm:$0xff]  ;;  %v708_v40 = vld [vmem:[#allocation6 + $0x148] sm:$0xff]  ;;  %v725_v44 = vld [vmem:[#allocation6 + $0x1d0] sm:$0xff]  ;;  %v1202_v45 = vpack.c.bf16 %v694_v43, %v693_v42  ;;  %v467_v20 = vsub.s32 3, %v454_v16 }
  0x76   : > { %v1232_v41 = vpack.c.bf16 %v708_v40, %v707_v39  ;;  %v709_v51 = vld [vmem:[#allocation6 + $0x150] sm:$0xff]  ;;  %v710_v52 = vld [vmem:[#allocation6 + $0x158] sm:$0xff]  ;;  %v695_v54 = vld [vmem:[#allocation6 + $0xe0] sm:$0xff] }
  0x77   : > { %v1236_v53 = vpack.c.bf16 %v710_v52, %v709_v51  ;;  %v696_v55 = vld [vmem:[#allocation6 + $0xe8] sm:$0xff]  ;;  %v727_v56 = vld [vmem:[#allocation6 + $0x1e0] sm:$0xff]  ;;  %v697_v3 = vld [vmem:[#allocation6 + $0xf0] sm:$0xff] }
  0x78   : > { %v1206_v57 = vpack.c.bf16 %v696_v55, %v695_v54  ;;  %v680_v60 = vld [vmem:[#allocation6 + $0x68] sm:$0xff]  ;;  %v698_v4 = vld [vmem:[#allocation6 + $0xf8] sm:$0xff]  ;;  %v729_v5 = vld [vmem:[#allocation6 + $0x1f0] sm:$0xff] }
  0x79   : > { %v1210_v6 = vpack.c.bf16 %v698_v4, %v697_v3  ;;  %v730_v7 = vld [vmem:[#allocation6 + $0x1f8] sm:$0xff] }
  0xc9   : > { %v364_v46 = vpop.permute.xlu0 %363 }
  0xca   : > { %370 = vst.msk [vmem:[#allocation2] sm:$0xff] %vm369_vm1, %v364_v46  ;;  %v366_v47 = vpop.permute.xlu1 %365  ;;  %v726_v46 = vld [vmem:[#allocation6 + $0x1d8] sm:$0xff] }
  0xcb   : > { %371 = vst.msk [vmem:[#allocation2 + $0x8] sm:$0xff] %vm369_vm1, %v366_v47  ;;  %v677_v47 = vld [vmem:[#allocation6 + $0x50] sm:$0xff] }
  0xcd   : > { %v377_v48 = vpop.permute.xlu0 %376 }
  0xce   : > { %383 = vst.msk [vmem:[#allocation2] sm:$0xff] %vm382_vm2, %v377_v48  ;;  %v379_v49 = vpop.permute.xlu1 %378  ;;  %v678_v48 = vld [vmem:[#allocation6 + $0x58] sm:$0xff] }
  0xcf   : > { %384 = vst.msk [vmem:[#allocation2 + $0x8] sm:$0xff] %vm382_vm2, %v379_v49  ;;  %v1234_v49 = vpack.c.bf16 %v726_v46, %v725_v44  ;;  %v1204_v50 = vpack.c.bf16 %v678_v48, %v677_v47 }
  0xd5   : > { %v385_v63 = vld [vmem:[#allocation2] sm:$0xff] }
  0xd6   : > { %538 = vmatmul.mubr.f32.vlgmr.msra.gmra.mrb[0].mxu0 %v385_v63  ;;  %615 = vmatmul.mubr.f32.vlgmr.msra.gmra.mrb[0].mxu1 %v385_v63  ;;  %v386_v8 = vld [vmem:[#allocation2 + $0x8] sm:$0xff]  ;;  %v711_v63 = vld [vmem:[#allocation6 + $0x160] sm:$0xff] }
  0xd7   : > { %543 = vmatprep.mubr.f32.mxu0 %v1465_v0  ;;  %620 = vmatprep.mubr.f32.mxu1 %v1465_v0  ;;  %v689_v0 = vld [vmem:[#allocation6 + $0xb0] sm:$0xff] }
  0xd8   : > { %1185 = vmatpush3.bf16.msra.mxu0 %v1184_v58  ;;  %1217 = vmatpush3.bf16.msra.mxu1 %v1216_v59  ;;  %v1194_v21 = vpack.c.bf16 %v690_v19, %v689_v0  ;;  %v728_v58 = vld [vmem:[#allocation6 + $0x1e8] sm:$0xff]  ;;  %v679_v59 = vld [vmem:[#allocation6 + $0x60] sm:$0xff]  ;;  %v451_v0 = vld [vmem:[%s1705_s4] sm:$0xf]  ;;  %v459_v19 = vsub.s32 1, %v454_v16 }
  0xd9   : > { %1187 = vmatprep.subr.bf16.mxu0 %v1186_v1  ;;  %1219 = vmatprep.subr.bf16.mxu1 %v1218_v2  ;;  %v1238_v61 = vpack.c.bf16 %v728_v58, %v727_v56  ;;  %v1208_v62 = vpack.c.bf16 %v680_v60, %v679_v59  ;;  %v712_v1 = vld [vmem:[#allocation6 + $0x168] sm:$0xff]  ;;  %v468_v24 = vrot.slane %v451_v0, %v467_v20 }
  0xda   : > { %544 = vmatmul.mubr.f32.gmra.mrb[2].mxu0 %v386_v8  ;;  %621 = vmatmul.mubr.f32.gmra.mrb[2].mxu1 %v386_v8  ;;  %v1240_v2 = vpack.c.bf16 %v712_v1, %v711_v63  ;;  %v681_v8 = vld [vmem:[#allocation6 + $0x70] sm:$0xff]  ;;  %v460_v23 = vrot.slane %v451_v0, %v459_v19 }
  0xdc   : > { %1189 = vmatpush3.bf16.msra.mxu0 %v1188_v9  ;;  %1221 = vmatpush3.bf16.msra.mxu1 %v1220_v10  ;;  %v682_v9 = vld [vmem:[#allocation6 + $0x78] sm:$0xff]  ;;  %v1242_v10 = vpack.c.bf16 %v730_v7, %v729_v5 }
  0xdd   : > { %1191 = vmatprep.subr.bf16.mxu0 %v1190_v12  ;;  %1223 = vmatprep.subr.bf16.mxu1 %v1222_v13  ;;  %v1212_v11 = vpack.c.bf16 %v682_v9, %v681_v8  ;;  %v713_v12 = vld [vmem:[#allocation6 + $0x170] sm:$0xff]  ;;  %v714_v13 = vld [vmem:[#allocation6 + $0x178] sm:$0xff] }
  0xde   : > { %v1244_v14 = vpack.c.bf16 %v714_v13, %v713_v12  ;;  %v1035_v12 = vld [vmem:[%s1707_s6] ss:$0 sm:$0xff] }
  0xe0   : > { %1193 = vmatpush3.bf16.msra.mxu0 %v1192_v17  ;;  %1225 = vmatpush3.bf16.msra.mxu1 %v1224_v18  ;;  %v455_v17 = vsub.s32 0, %v454_v16  ;;  %v463_v18 = vsub.s32 2, %v454_v16 }
  0xe1   : > { %1195 = vmatprep.subr.bf16.mxu0 %v1194_v21  ;;  %1227 = vmatprep.subr.bf16.mxu1 %v1226_v25 }
  0xe2   : > { %v456_v21 = vrot.slane %v451_v0, %v455_v17  ;;  %v464_v22 = vrot.slane %v451_v0, %v463_v18 }
  0xe4   : > { %1197 = vmatpush3.bf16.msra.mxu0 %v1196_v26  ;;  %1229 = vmatpush3.bf16.msra.mxu1 %v1228_v29 }
  0xe5   : > { %1199 = vmatprep.subr.bf16.mxu0 %v1198_v33  ;;  %1231 = vmatprep.subr.bf16.mxu1 %v1230_v37 }
  0xe8   : > { %1201 = vmatpush3.bf16.msra.mxu0 %v1200_v38  ;;  %1233 = vmatpush3.bf16.msra.mxu1 %v1232_v41 }
  0xe9   : > { %1203 = vmatprep.subr.bf16.mxu0 %v1202_v45  ;;  %1235 = vmatprep.subr.bf16.mxu1 %v1234_v49 }
  0xec   : > { %1205 = vmatpush3.bf16.msra.mxu0 %v1204_v50  ;;  %1237 = vmatpush3.bf16.msra.mxu1 %v1236_v53 }
  0xed   : > { %1207 = vmatprep.subr.bf16.mxu0 %v1206_v57  ;;  %1239 = vmatprep.subr.bf16.mxu1 %v1238_v61 }
  0xf0   : > { %1209 = vmatpush3.bf16.msra.mxu0 %v1208_v62  ;;  %1241 = vmatpush3.bf16.msra.mxu1 %v1240_v2 }
  0xf1   : > { %1211 = vmatprep.subr.bf16.mxu0 %v1210_v6  ;;  %1243 = vmatprep.subr.bf16.mxu1 %v1242_v10 }
  0xf4   : > { %1213 = vmatpush3.bf16.msra.mxu0 %v1212_v11  ;;  %1245 = vmatpush3.bf16.msra.mxu1 %v1244_v14 }
 0x1a9   : > { %v539_v25 = vpop.f32.mrb[0].mxu0  ;;  %v616_v26 = vpop.f32.mrb[0].mxu1 }
 0x1aa   : > { %v540_v27 = vadd.f32 %v539_v25, %v456_v21  ;;  %v617_v28 = vadd.f32 %v616_v26, %v464_v22  ;;  %v541_v29 = vpop.f32.mrb[1].mxu0  ;;  %v618_v30 = vpop.f32.mrb[1].mxu1 }
 0x1ab   : > { %v542_v31 = vadd.f32 %v541_v29, %v460_v23  ;;  %v619_v32 = vadd.f32 %v618_v30, %v468_v24 }
 0x1ac   : > { %v635_v33 = vmul.f32 1.442695, %v540_v27  ;;  %v639_v34 = vmul.f32 1.442695, %v617_v28  ;;  %vm627_vm4 = vcmp.gt.f32.partialorder %v540_v27, 0.0  ;;  %vm629_vm6 = vcmp.gt.f32.partialorder %v617_v28, 0.0 }
 0x1ad   : > { %v637_v35 = vmul.f32 1.442695, %v542_v31  ;;  %v641_v36 = vmul.f32 1.442695, %v619_v32  ;;  %v545_v37 = vpop.f32.mrb[2].mxu0  ;;  %v622_v38 = vpop.f32.mrb[2].mxu1 }
 0x1ae   : > { %1315 = vpow2.f32 %v635_v33  ;;  %v546_v39 = vadd.f32 %v545_v37, %v456_v21  ;;  %v623_v40 = vadd.f32 %v622_v38, %v464_v22  ;;  %v547_v41 = vpop.f32.mrb[3].mxu0  ;;  %v624_v42 = vpop.f32.mrb[3].mxu1  ;;  %vm628_vm3 = vcmp.gt.f32.partialorder %v542_v31, 0.0 }
 0x1af   : > { %1317 = vpow2.f32 %v639_v34  ;;  %v548_v43 = vadd.f32 %v547_v41, %v460_v23  ;;  %v625_v44 = vadd.f32 %v624_v42, %v468_v24  ;;  %vm630_vm5 = vcmp.gt.f32.partialorder %v619_v32, 0.0 }
 0x1b0   : > { %1319 = vpow2.f32 %v637_v35  ;;  %v643_v45 = vmul.f32 1.442695, %v546_v39  ;;  %v647_v46 = vmul.f32 1.442695, %v623_v40  ;;  %vm631_vm9 = vcmp.gt.f32.partialorder %v546_v39, 0.0 }
 0x1b1   : > { %1321 = vpow2.f32 %v641_v36  ;;  %v645_v47 = vmul.f32 1.442695, %v548_v43  ;;  %v649_v48 = vmul.f32 1.442695, %v625_v44  ;;  %vm632_vm7 = vcmp.gt.f32.partialorder %v548_v43, 0.0 }
 0x1b2   : > { %1323 = vpow2.f32 %v643_v45  ;;  %vm634_vm8 = vcmp.gt.f32.partialorder %v625_v44, 0.0  ;;  %vm633_vm10 = vcmp.gt.f32.partialorder %v623_v40, 0.0 }
 0x1b3   : > { %1325 = vpow2.f32 %v647_v46 }
 0x1b4   : > { %1327 = vpow2.f32 %v645_v47 }
 0x1b5   : > { %1329 = vpow2.f32 %v649_v48 }
 0x1b8   : > { %v1316_v49 = vpop.eup %1315 }
 0x1b9   : > { %v1318_v50 = vpop.eup %1317  ;;  %v1027_v52 = vadd.f32 -1.0, %v1316_v49 }
 0x1ba   : > { %v1320_v51 = vpop.eup %1319  ;;  %v1029_v54 = vadd.f32 -1.0, %v1318_v50 }
 0x1bb   : > { %v1322_v53 = vpop.eup %1321  ;;  %v1028_v55 = vadd.f32 -1.0, %v1320_v51  ;;  %v659_v61 = vsel %vm627_vm4, %v540_v27, %v1027_v52 }
 0x1bc   : > { %v1324_v56 = vpop.eup %1323  ;;  %v1030_v57 = vadd.f32 -1.0, %v1322_v53  ;;  %v661_v2 = vsel %vm629_vm6, %v617_v28, %v1029_v54 }
 0x1bd   : > { %v1326_v58 = vpop.eup %1325  ;;  %v660_v59 = vsel %vm628_vm3, %v542_v31, %v1028_v55  ;;  %v1031_v63 = vadd.f32 -1.0, %v1324_v56 }
 0x1be   : > { %v1328_v60 = vpop.eup %1327  ;;  %802 = vmatprep.mubr.f32.mxu0 %v660_v59  ;;  %v662_v62 = vsel %vm630_vm5, %v619_v32, %v1030_v57  ;;  %v1033_v4 = vadd.f32 -1.0, %v1326_v58 }
 0x1bf   : > { %v1330_v1 = vpop.eup %1329  ;;  %877 = vmatprep.mubr.f32.mxu1 %v662_v62  ;;  %803 = vmatmul.mubr.f32.vlgmr.msra.gmra.mrb[4].mxu0 %v659_v61  ;;  %v1032_v3 = vadd.f32 -1.0, %v1328_v60  ;;  %v663_v8 = vsel %vm631_vm9, %v546_v39, %v1031_v63 }
 0x1c0   : > { %878 = vmatmul.mubr.f32.vlgmr.msra.gmra.mrb[4].mxu1 %v661_v2  ;;  %v1034_v5 = vadd.f32 -1.0, %v1330_v1  ;;  %v665_v9 = vsel %vm633_vm10, %v623_v40, %v1033_v4 }
 0x1c1   : > { %v664_v6 = vsel %vm632_vm7, %v548_v43, %v1032_v3 }
 0x1c2   : > { %807 = vmatprep.mubr.f32.mxu0 %v664_v6  ;;  %v666_v7 = vsel %vm634_vm8, %v625_v44, %v1034_v5 }
 0x1c3   : > { %882 = vmatprep.mubr.f32.mxu1 %v666_v7  ;;  %808 = vmatmul.mubr.f32.gmra.mrb[6].mxu0 %v663_v8 }
 0x1c4   : > { %883 = vmatmul.mubr.f32.gmra.mrb[6].mxu1 %v665_v9 }
 0x292   : > { %v1074_v10 = vpop.f32.mrb[4].mxu0 }
 0x293   : > { %v1112_v11 = vpop.f32.mrb[4].mxu1  ;;  %v1075_v13 = vpop.f32.mrb[5].mxu0 }
 0x294   : > { %v1076_v14 = vadd.f32 %v1075_v13, %v1074_v10  ;;  %v1113_v15 = vpop.f32.mrb[5].mxu1 }
 0x295   : > { %v1114_v16 = vadd.f32 %v1113_v15, %v1112_v11 }
 0x296   : > { %v805_v17 = vadd.f32 %v1076_v14, %v1035_v12  ;;  %v1077_v18 = vpop.f32.mrb[6].mxu0 }
 0x297   : > { %v1115_v0 = vpop.f32.mrb[6].mxu1  ;;  %v1078_v19 = vpop.f32.mrb[7].mxu0 }
 0x298   : > { %v880_v20 = vadd.f32 %v1114_v16, %v805_v17  ;;  %v1079_v21 = vadd.f32 %v1078_v19, %v1077_v18  ;;  %v1116_v22 = vpop.f32.mrb[7].mxu1 }
 0x299   : > { %v1117_v23 = vadd.f32 %v1116_v22, %v1115_v0 }
 0x29a   : > { %888 = vst [vmem:[%s334_s21] sm:$0xff] %v880_v20  ;;  %v810_v24 = vadd.f32 %v1079_v21, %v1035_v12 }
 0x29c   : > { %v885_v25 = vadd.f32 %v1117_v23, %v810_v24 }
 0x29e   : > { %889 = vst [vmem:[%s334_s21 + $0x8] sm:$0xff] %v885_v25 }
 0x29f   : > { %1400 = shalt.err (!%p1397_p11)
}
 0x2a0   : > { %s1401_s19 = scalar_lea.hbm %s1658_s9, 256  ;;  %s1405_s18 = scalar_lea.hbm %s1708_s7, 1024 }
 0x2a1   : > { %p1402_p13 = scmp.ne.s32.totalorder %s1658_s9, %s1401_s19  ;;  %p1406_p6 = scmp.lt.u32.totalorder %s1658_s9, %s1708_s7 }
 0x2a2   : > { %p1407_p9 = scmp.lt.u32.totalorder %s1405_s18, %s1401_s19  ;;  %p1409_p12 = scmp.lt.u32.totalorder %s1401_s19, %s1658_s9 }
 0x2a3   : > { %p1403_p0 = pnand %p1402_p13, %p1722_p1 }
 0x2a4   : > { %p1408_p10 = por %p1407_p9, %p1406_p6 }
 0x2a5   : > { %p1404_p5 = pneg %p1403_p0 }
 0x2a6   : > { %p1410_p2 = por %p1409_p12, %p1408_p10 }
 0x2a8   : > { %p1411_p3 = pnand %p1410_p2, %p1404_p5 }
 0x2aa   : > { %1414 = shalt.err (!%p1411_p3)
}
 0x2ab   : > { %s1469_s23 = smov 128   ;;  %s1470_s29 = smov 8  }
 0x2ac   : > { %1254 = dma.vmem_to_hbm [thread:$0]  (%p1722_p1), %s1653_s22, 256, %s1658_s9, %s1660_s15, %s1469_s23, %s1469_s23, %s1470_s29  }
 0x2ad PF: > { %p1271_p4 = scmp.ge.s32.totalorder %s1457_s27, 2  ;;  %s919_s8 = sand.u32 1, %s1445_s24  }
 0x2ae   : > { %p1723_p7 = scmp.ne.s32.totalorder %s1714_s12, 0  ;;  %s920_s10 = scalar_lea.sflag [#allocation5], %s919_s8 }
 0x2b0   : > { %p1264_p8 = pnand %p1271_p4, %p1723_p7 }
 0x2b2   : > { %1440 = dma.done.wait (!%p1264_p8), %s920_s10, 256  }
 0x2b3   : > { %1442 = vsyncadd (!%p1264_p8), %s920_s10, 4294967040  ;;  %s1724_s28 = sld [smem:[#allocation12_spill]]  ;;  %p19_p11 = scmp.ge.s32.totalorder %s1536_s30, 6  }
 0x2b4   : > { %s1725_s24 = smov %s1449_s25  ;;  %s1726_s25 = smov %s1453_s26 }
 0x2b5   : > { %s1728_s27 = smov %s1536_s30  ;;  %21 = sbr.rel (!%p19_p11) target bundleno = 5 (0x5), region = 98 }
 0x2b9   : > { %s1727_s26 = smov %s1724_s28 }
 0x2bc   :  { %925 = vsyncpa [#allocation4], 1 }
 0x2bd   :  { %927 = vsyncpa [#allocation4 + $0x1], 1 }
 0x2be   :  { %928 = vsyncpa [#allocation7], 1 }
 0x2bf   :  { %929 = vsyncpa [#allocation5], 1 }
 0x2c0   :  { %931 = vsyncpa [#allocation5 + $0x1], 1 }

</bundles_post_ra>
